<compile_context>
chip_gen: v5e
topology: v5e:2x2
jax: 0.10.0
libtpu: 0.0.40
codegen_flags: <defaults>
</compile_context>

<pallas_src>
import jax
import jax.numpy as jnp
from jax.experimental import pallas as pl
from jax.experimental.pallas import tpu as pltpu

KH, KW = 3, 3   # pooling window
STRIDE = 1      # stride 1, no padding -> Hout = H - 2, Wout = W - 2


def maxpool_kernel(x_ref, o_ref):
    # x_ref: (nb, cb, H, W) VMEM tile; o_ref: (nb, cb, Hout, Wout).
    x = x_ref[...]
    hout = o_ref.shape[-2]
    wout = o_ref.shape[-1]

    # Separable 3x3 max (exact): 2 maxima along W (lanes), then 2 along H
    # (sublanes) -> 4 VPU maxima per output element instead of 8.
    row = jnp.maximum(x[..., :, 0:wout], x[..., :, 1:1 + wout])
    row = jnp.maximum(row, x[..., :, 2:2 + wout])              # (nb, cb, H, Wout)
    out = jnp.maximum(row[..., 0:hout, :], row[..., 1:1 + hout, :])
    out = jnp.maximum(out, row[..., 2:2 + hout, :])            # (nb, cb, Hout, Wout)

    o_ref[...] = out.astype(o_ref.dtype)


def _tensorcores_per_chip():
    """2 for megacore-style chips (v4 / v5p / v7x), 1 for v5e / v6e."""
    try:
        kind = jax.devices()[0].device_kind.lower().replace(" ", "")
    except Exception:
        return 1
    if "v7" in kind or "v5p" in kind or "v4" in kind:
        return 2
    return 1


def _choose_blocks(n, c, h, w, itemsize, n_tc, max_in_block_bytes=6 << 20):
    """Pick (batch_block, channel_block) so that:
       * 1-TC chips get a single grid step when everything fits (overhead),
       * 2-TC chips get >= 2 'parallel' grid steps (batch first, else C),
       * each input block stays under the VMEM budget (C-tiling, no halo)."""
    # Batch block.
    if n_tc > 1 and n >= n_tc:
        nb = next(d for d in range(n // n_tc, 0, -1) if n % d == 0)
    else:
        nb = n

    # Channel block: channels are independent -> natural tiling axis.
    steps_wanted = max(1, n_tc // max(1, n // nb))   # extra parallelism over C
    plane_bytes = h * w * itemsize

    def shrink(cb):
        cb -= 1
        while cb > 1 and c % cb:
            cb -= 1
        return max(cb, 1)

    cb = c
    while cb > 1 and c // cb < steps_wanted:
        cb = shrink(cb)
    while cb > 1 and nb * cb * plane_bytes > max_in_block_bytes:
        cb = shrink(cb)
    # If a single (H,W) plane still exceeds the budget, W-tiling with a 2-col
    # halo (element-offset indexing / manual DMA) would be the next step.
    return nb, cb


def maxpool2d_3x3(x):
    n, c, h, w = x.shape
    hout, wout = h - (KH - 1), w - (KW - 1)
    itemsize = jnp.dtype(x.dtype).itemsize

    n_tc = _tensorcores_per_chip()
    nb, cb = _choose_blocks(n, c, h, w, itemsize, n_tc)

    out_elems = n * c * hout * wout
    cost = pl.CostEstimate(
        flops=4 * out_elems,                                   # 4 maxima / output elem
        transcendentals=0,
        bytes_accessed=(n * c * h * w + out_elems) * itemsize,  # HBM-bound, ~1:1 R/W
    )

    return pl.pallas_call(
        maxpool_kernel,
        out_shape=jax.ShapeDtypeStruct((n, c, hout, wout), x.dtype),
        grid_spec=pltpu.PrefetchScalarGridSpec(
            num_scalar_prefetch=0,
            grid=(n // nb, c // cb),
            in_specs=[
                pl.BlockSpec((nb, cb, h, w), lambda i, j: (i, j, 0, 0)),
            ],
            out_specs=pl.BlockSpec((nb, cb, hout, wout), lambda i, j: (i, j, 0, 0)),
        ),
        compiler_params=pltpu.CompilerParams(
            dimension_semantics=("parallel", "parallel"),
            vmem_limit_bytes=32 * 1024 * 1024,
        ),
        cost_estimate=cost,
    )(x)


if __name__ == "__main__":
    key = jax.random.PRNGKey(0)
    # Small NCHW input consistent with the module's forward: (2, 4, 16, 16)
    x = jax.random.normal(key, (2, 4, 16, 16), dtype=jnp.float32)

    out = jax.block_until_ready(maxpool2d_3x3(x))

    # Bit-exact check against pure-JAX reference (max-pool should be exact).
    ref = jax.lax.reduce_window(
        x, -jnp.inf, jax.lax.max,
        window_dimensions=(1, 1, KH, KW),
        window_strides=(1, 1, STRIDE, STRIDE),
        padding="VALID",
    )
    assert out.shape == (2, 4, 14, 14)
    assert bool(jnp.array_equal(out, ref)), "Pallas maxpool mismatch vs reference"

    print("KERNEL_OK")
</pallas_src>

<mosaic_0001>
module attributes {stable_mosaic.version = 11 : i64} {
  func.func @maxpool_kernel(%arg0: i32, %arg1: i32, %arg2: memref<2x4x16x16xf32, #tpu.memory_space<vmem>>, %arg3: memref<2x4x14x14xf32, #tpu.memory_space<vmem>>) attributes {dimension_semantics = [#tpu.dimension_semantics<parallel>, #tpu.dimension_semantics<parallel>], iteration_bounds = array<i64: 1, 1>, scalar_prefetch = 0 : i64, scratch_operands = 0 : i64, tpu.core_type = #tpu.core_type<tc>, window_params = [{transform_indices = @transform_0, window_bounds = array<i64: 2, 4, 16, 16>}, {transform_indices = @transform_1, window_bounds = array<i64: 2, 4, 14, 14>}]} {
    %c0 = arith.constant 0 : index
    %c0_0 = arith.constant 0 : index
    %c0_1 = arith.constant 0 : index
    %c0_2 = arith.constant 0 : index
    %0 = vector.load %arg2[%c0, %c0_0, %c0_1, %c0_2] : memref<2x4x16x16xf32, #tpu.memory_space<vmem>>, vector<2x4x16x16xf32>
    %1 = vector.extract_strided_slice %0 {offsets = [0, 0, 0, 0], sizes = [2, 4, 16, 14], strides = [1, 1, 1, 1]} : vector<2x4x16x16xf32> to vector<2x4x16x14xf32>
    %2 = vector.extract_strided_slice %0 {offsets = [0, 0, 0, 1], sizes = [2, 4, 16, 14], strides = [1, 1, 1, 1]} : vector<2x4x16x16xf32> to vector<2x4x16x14xf32>
    %3 = arith.maximumf %1, %2 : vector<2x4x16x14xf32>
    %4 = vector.extract_strided_slice %0 {offsets = [0, 0, 0, 2], sizes = [2, 4, 16, 14], strides = [1, 1, 1, 1]} : vector<2x4x16x16xf32> to vector<2x4x16x14xf32>
    %5 = arith.maximumf %3, %4 : vector<2x4x16x14xf32>
    %6 = vector.extract_strided_slice %5 {offsets = [0, 0, 0, 0], sizes = [2, 4, 14, 14], strides = [1, 1, 1, 1]} : vector<2x4x16x14xf32> to vector<2x4x14x14xf32>
    %7 = vector.extract_strided_slice %5 {offsets = [0, 0, 1, 0], sizes = [2, 4, 14, 14], strides = [1, 1, 1, 1]} : vector<2x4x16x14xf32> to vector<2x4x14x14xf32>
    %8 = arith.maximumf %6, %7 : vector<2x4x14x14xf32>
    %9 = vector.extract_strided_slice %5 {offsets = [0, 0, 2, 0], sizes = [2, 4, 14, 14], strides = [1, 1, 1, 1]} : vector<2x4x16x14xf32> to vector<2x4x14x14xf32>
    %10 = arith.maximumf %8, %9 : vector<2x4x14x14xf32>
    %c0_3 = arith.constant 0 : index
    %c0_4 = arith.constant 0 : index
    %c0_5 = arith.constant 0 : index
    %c0_6 = arith.constant 0 : index
    %11 = vector.load %arg3[%c0_3, %c0_4, %c0_5, %c0_6] : memref<2x4x14x14xf32, #tpu.memory_space<vmem>>, vector<2x4x14x14xf32>
    tpu.vector_store %arg3[%c0_3, %c0_4, %c0_5, %c0_6], %10 {strides = array<i32>} : memref<2x4x14x14xf32, #tpu.memory_space<vmem>>, vector<2x4x14x14xf32>,
    return
  }
  func.func @transform_0(%arg0: i32, %arg1: i32) -> (i32, i32, i32, i32) {
    %c0_i32 = arith.constant 0 : i32
    %c0_i32_0 = arith.constant 0 : i32
    %c0_i32_1 = arith.constant 0 : i32
    return %arg0, %arg1, %c0_i32, %c0_i32_0 : i32, i32, i32, i32
  }
  func.func @transform_1(%arg0: i32, %arg1: i32) -> (i32, i32, i32, i32) {
    %c0_i32 = arith.constant 0 : i32
    %c0_i32_0 = arith.constant 0 : i32
    %c0_i32_1 = arith.constant 0 : i32
    return %arg0, %arg1, %c0_i32, %c0_i32_0 : i32, i32, i32, i32
  }
}

</mosaic_0001>

<bundles_post_ra>
// kernel: tpu_custom_call.1
= control target key start
LH: loop header
LB: loop body
LE: loop exit
PB: predicated region body
PF: predicated region fallthrough
CT: control target
= control target key end

     0   :  { %6 = vsyncpa [#allocation3], 0  ;;  %s368_s9 = smov [#allocation2]   ;;  %s369_s11 = smov 128   ;;  %s612_s0 = inlined_call_operand.hbm [shape: f32[2,4,16,16], index: 0, kind: input, shape index: {}]   ;;  %s613_s1 = inlined_call_operand.vmem [shape: f32[2,4,14,14], index: 1, kind: output, shape index: {}]  }
   0x1   :  { %s11_s8 = sshll.u32 %s612_s0, 4  ;;  %s13_s10 = sshll.u32 %s368_s9, 4  ;;  %s12_s8 = int_to_ptr.hbm [resolvable:$true] %s11_s8  ;;  %s14_s10 = int_to_ptr.vmem [resolvable:$true] %s13_s10 }
   0x2   :  { %s370_s12 = smov 8  }
   0x3   :  { %19 = dma.hbm_to_vmem [thread:$0]  %s12_s8, 2048, %s14_s10, [#allocation3], %s369_s11, %s369_s11, %s370_s12  }
   0x4   :  { %366 = dma.done.wait [#allocation3], 2048  }
   0x5   :  { %367 = vsyncadd [#allocation3], 4294965248  ;;  %v386_v0 = vld [vmem:[#allocation2 + $0x20] sm:$0xff]  ;;  %v388_v1 = vld [vmem:[#allocation2 + $0x10] sm:$0xff]  ;;  %s371_s13 = smov 127   ;;  %s372_s0 = smov 126  }
   0x6   :  { %v390_v2 = vld [vmem:[#allocation2] sm:$0xff]  ;;  %64 = vrot.lane.b32.xlu2 %v386_v0, %s371_s13  ;;  %60 = vrot.lane.b32.xlu1 %v388_v1, %s371_s13  ;;  %v398_v3 = vld [vmem:[#allocation2 + $0x28] sm:$0xff]  ;;  %v400_v4 = vld [vmem:[#allocation2 + $0x18] sm:$0xff]  ;;  %vm316_vm0 = vcmask 111616   ;;  %vm200_vm1 = vcmask 1046528   ;;  %vm257_vm2 = vcmask 1045504  }
   0x7   :  { %56 = vrot.lane.b32.xlu0 %v390_v2, %s371_s13  ;;  %v25_v5 = vld [vmem:[#allocation2 + $0x8] sm:$0xff]  ;;  %v407_v6 = vld [vmem:[#allocation2 + $0x40] sm:$0xff]  ;;  %v409_v7 = vld [vmem:[#allocation2 + $0x38] sm:$0xff]  ;;  %vm314_vm3 = vcmask 113664  }
   0x8   :  { %v411_v8 = vld [vmem:[#allocation2 + $0x30] sm:$0xff]  ;;  %v419_v9 = vld [vmem:[#allocation2 + $0x58] sm:$0xff]  ;;  %v423_v11 = vld [vmem:[#allocation2 + $0x48] sm:$0xff] }
   0x9   :  { %v421_v10 = vld [vmem:[#allocation2 + $0x50] sm:$0xff]  ;;  %v433_v13 = vld [vmem:[#allocation2 + $0x68] sm:$0xff]  ;;  %v435_v14 = vld [vmem:[#allocation2 + $0x60] sm:$0xff] }
   0xa   :  { %v431_v12 = vld [vmem:[#allocation2 + $0x70] sm:$0xff]  ;;  %v443_v15 = vld [vmem:[#allocation2 + $0x78] sm:$0xff] }
   0xe   :  { %66 = vrot.lane.b32.xlu2 %v398_v3, %s371_s13  ;;  %62 = vrot.lane.b32.xlu1 %v400_v4, %s371_s13 }
   0xf   :  { %58 = vrot.lane.b32.xlu0 %v25_v5, %s371_s13 }
  0x16   :  { %72 = vrot.lane.b32.xlu2 %v407_v6, %s371_s13  ;;  %70 = vrot.lane.b32.xlu1 %v409_v7, %s371_s13 }
  0x17   :  { %68 = vrot.lane.b32.xlu0 %v411_v8, %s371_s13 }
  0x1e   :  { %78 = vrot.lane.b32.xlu2 %v419_v9, %s371_s13  ;;  %76 = vrot.lane.b32.xlu1 %v421_v10, %s371_s13 }
  0x1f   :  { %74 = vrot.lane.b32.xlu0 %v423_v11, %s371_s13 }
  0x26   :  { %84 = vrot.lane.b32.xlu2 %v431_v12, %s371_s13  ;;  %82 = vrot.lane.b32.xlu1 %v433_v13, %s371_s13 }
  0x27   :  { %80 = vrot.lane.b32.xlu0 %v435_v14, %s371_s13 }
  0x2e   :  { %122 = vrot.lane.b32.xlu2 %v25_v5, %s372_s0  ;;  %120 = vrot.lane.b32.xlu1 %v390_v2, %s372_s0 }
  0x2f   :  { %86 = vrot.lane.b32.xlu0 %v443_v15, %s371_s13 }
  0x36   :  { %128 = vrot.lane.b32.xlu2 %v386_v0, %s372_s0  ;;  %126 = vrot.lane.b32.xlu1 %v400_v4, %s372_s0 }
  0x37   :  { %124 = vrot.lane.b32.xlu0 %v388_v1, %s372_s0 }
  0x3e   :  { %134 = vrot.lane.b32.xlu2 %v409_v7, %s372_s0  ;;  %132 = vrot.lane.b32.xlu1 %v411_v8, %s372_s0 }
  0x3f   :  { %130 = vrot.lane.b32.xlu0 %v398_v3, %s372_s0 }
  0x46   :  { %140 = vrot.lane.b32.xlu2 %v421_v10, %s372_s0  ;;  %138 = vrot.lane.b32.xlu1 %v423_v11, %s372_s0 }
  0x47   :  { %136 = vrot.lane.b32.xlu0 %v407_v6, %s372_s0 }
  0x4e   :  { %146 = vrot.lane.b32.xlu2 %v433_v13, %s372_s0  ;;  %144 = vrot.lane.b32.xlu1 %v435_v14, %s372_s0 }
  0x4f   :  { %142 = vrot.lane.b32.xlu0 %v419_v9, %s372_s0 }
  0x56   :  { %150 = vrot.lane.b32.xlu1 %v443_v15, %s372_s0 }
  0x57   :  { %148 = vrot.lane.b32.xlu0 %v431_v12, %s372_s0 }
  0x60   :  { %v462_v16 = vpop.permute.xlu2 %64 }
  0x68   :  { %v464_v17 = vpop.permute.xlu2 %66 }
  0x70   :  { %v466_v18 = vpop.permute.xlu2 %72 }
  0x78   :  { %v468_v19 = vpop.permute.xlu2 %78  ;;  %v61_v20 = vpop.permute.xlu1 %60 }
  0x79   :  { %v57_v21 = vpop.permute.xlu0 %56  ;;  %v106_v58 = vmax.f32 %v388_v1, %v61_v20 }
  0x7a   :  { %v104_v45 = vmax.f32 %v390_v2, %v57_v21 }
  0x80   :  { %v470_v22 = vpop.permute.xlu2 %84  ;;  %v63_v23 = vpop.permute.xlu1 %62 }
  0x81   :  { %v59_v24 = vpop.permute.xlu0 %58  ;;  %v107_v55 = vmax.f32 %v400_v4, %v63_v23 }
  0x82   :  { %v105_v25 = vmax.f32 %v25_v5, %v59_v24 }
  0x88   :  { %v71_v26 = vpop.permute.xlu1 %70  ;;  %v123_v27 = vpop.permute.xlu2 %122 }
  0x89   :  { %v169_v28 = vmax.f32 %v105_v25, %v123_v27  ;;  %v472_v29 = vpop.permute.xlu0 %68  ;;  %v111_v37 = vmax.f32 %v409_v7, %v71_v26  ;;  %v108_v25 = vmax.f32 %v386_v0, %v462_v16 }
  0x8a   :  { %v110_v27 = vmax.f32 %v411_v8, %v472_v29 }
  0x8b   :  { %v202_v30 = vrot.slane %v169_v28, 1  ;;  %v259_v32 = vrot.slane %v169_v28, 2 }
  0x8d   :  { %v242_v31 = vmax.f32 %v169_v28, %v202_v30 }
  0x8f   :  { %v299_v33 = vmax.f32 %v242_v31, %v259_v32 }
  0x90   :  { %v474_v34 = vpop.permute.xlu1 %76  ;;  %v129_v35 = vpop.permute.xlu2 %128 }
  0x91   :  { %317 = vst.msk [vmem:[%s613_s1 + $0x8] sm:$0x3f] %vm316_vm0, %v299_v33  ;;  %v480_v36 = vpop.permute.xlu0 %74  ;;  %v172_v33 = vmax.f32 %v108_v25, %v129_v35 }
  0x93   :  { %v207_v35 = vrot.slane %v172_v33, 1 }
  0x98   :  { %v83_v38 = vpop.permute.xlu1 %82  ;;  %v135_v39 = vpop.permute.xlu2 %134 }
  0x99   :  { %v483_v40 = vmax.f32 %v111_v37, %v135_v39  ;;  %v485_v41 = vpop.permute.xlu0 %80  ;;  %v117_v56 = vmax.f32 %v433_v13, %v83_v38  ;;  %v264_v39 = vrot.slane %v172_v33, 2 }
  0x9b   :  { %v211_v42 = vrot.slane %v483_v40, 1  ;;  %v268_v44 = vrot.slane %v483_v40, 2 }
  0x9d   :  { %v248_v43 = vmax.f32 %v483_v40, %v211_v42 }
  0x9f   :  { %v305_v46 = vmax.f32 %v248_v43, %v268_v44 }
  0xa0   :  { %v493_v47 = vpop.permute.xlu2 %140  ;;  %v121_v48 = vpop.permute.xlu1 %120 }
  0xa1   :  { %323 = vst.msk [vmem:[%s613_s1 + $0x38] sm:$0x3f] %vm316_vm0, %v305_v46  ;;  %v168_v49 = vmax.f32 %v104_v45, %v121_v48  ;;  %v499_v50 = vpop.permute.xlu0 %86 }
  0xa3   :  { %v201_v51 = vrot.slane %v168_v49, 1  ;;  %v258_v52 = vrot.slane %v168_v49, 2 }
  0xa5   :  { %v203_v53 = vsel %vm200_vm1, %v201_v51, %v202_v30  ;;  %v260_v57 = vsel %vm257_vm2, %v258_v52, %v259_v32  ;;  %v109_v32 = vmax.f32 %v398_v3, %v464_v17 }
  0xa6   :  { %v241_v54 = vmax.f32 %v168_v49, %v203_v53  ;;  %v113_v53 = vmax.f32 %v423_v11, %v480_v36 }
  0xa8   :  { %v298_v59 = vmax.f32 %v241_v54, %v260_v57  ;;  %v147_v60 = vpop.permute.xlu2 %146  ;;  %v127_v61 = vpop.permute.xlu1 %126 }
  0xa9   :  { %v506_v62 = vmax.f32 %v117_v56, %v147_v60  ;;  %v171_v63 = vmax.f32 %v107_v55, %v127_v61  ;;  %v125_v2 = vpop.permute.xlu0 %124  ;;  %v112_v56 = vmax.f32 %v407_v6, %v466_v18 }
  0xaa   :  { %315 = vst.msk [vmem:[%s613_s1] sm:$0xff] %vm314_vm3, %v298_v59  ;;  %v170_v4 = vmax.f32 %v106_v58, %v125_v2 }
  0xab   :  { %v220_v5 = vrot.slane %v506_v62, 1  ;;  %v205_v7 = vrot.slane %v171_v63, 1  ;;  %v262_v13 = vrot.slane %v171_v63, 2  ;;  %v277_v20 = vrot.slane %v506_v62, 2 }
  0xac   :  { %v204_v21 = vrot.slane %v170_v4, 1  ;;  %v261_v23 = vrot.slane %v170_v4, 2 }
  0xad   :  { %v254_v1 = vmax.f32 %v506_v62, %v220_v5  ;;  %v244_v24 = vmax.f32 %v171_v63, %v205_v7  ;;  %v114_v63 = vmax.f32 %v421_v10, %v474_v34 }
  0xae   :  { %v206_v26 = vsel %vm200_vm1, %v204_v21, %v205_v7  ;;  %v263_v37 = vsel %vm257_vm2, %v261_v23, %v262_v13  ;;  %v115_v21 = vmax.f32 %v419_v9, %v468_v19 }
  0xaf   :  { %v311_v28 = vmax.f32 %v254_v1, %v277_v20  ;;  %v301_v30 = vmax.f32 %v244_v24, %v262_v13  ;;  %v243_v31 = vmax.f32 %v170_v4, %v206_v26  ;;  %v116_v4 = vmax.f32 %v435_v14, %v485_v41 }
  0xb0   :  { %v133_v38 = vpop.permute.xlu1 %132  ;;  %v178_v23 = vmax.f32 %v114_v63, %v493_v47 }
  0xb1   :  { %329 = vst.msk [vmem:[%s613_s1 + $0x68] sm:$0x3f] %vm316_vm0, %v311_v28  ;;  %v300_v0 = vmax.f32 %v243_v31, %v263_v37  ;;  %v174_v16 = vmax.f32 %v110_v27, %v133_v38  ;;  %v131_v8 = vpop.permute.xlu0 %130 }
  0xb2   :  { %319 = vst.msk [vmem:[%s613_s1 + $0x18] sm:$0x3f] %vm316_vm0, %v301_v30  ;;  %v173_v29 = vmax.f32 %v109_v32, %v131_v8  ;;  %v216_v19 = vrot.slane %v178_v23, 1  ;;  %v273_v28 = vrot.slane %v178_v23, 2 }
  0xb3   :  { %318 = vst.msk [vmem:[%s613_s1 + $0x10] sm:$0xff] %vm314_vm3, %v300_v0  ;;  %v210_v3 = vrot.slane %v174_v16, 1  ;;  %v267_v17 = vrot.slane %v174_v16, 2  ;;  %v118_v0 = vmax.f32 %v431_v12, %v470_v22 }
  0xb4   :  { %v208_v43 = vrot.slane %v173_v29, 1  ;;  %v265_v45 = vrot.slane %v173_v29, 2 }
  0xb5   :  { %v212_v46 = vsel %vm200_vm1, %v210_v3, %v211_v42  ;;  %v269_v54 = vsel %vm257_vm2, %v267_v17, %v268_v44 }
  0xb6   :  { %v247_v48 = vmax.f32 %v174_v16, %v212_v46  ;;  %v209_v49 = vsel %vm200_vm1, %v207_v35, %v208_v43  ;;  %v246_v51 = vmax.f32 %v173_v29, %v208_v43  ;;  %v266_v52 = vsel %vm257_vm2, %v264_v39, %v265_v45 }
  0xb7   :  { %v245_v55 = vmax.f32 %v172_v33, %v209_v49  ;;  %v119_v33 = vmax.f32 %v443_v15, %v499_v50 }
  0xb8   :  { %v304_v57 = vmax.f32 %v247_v48, %v269_v54  ;;  %v303_v58 = vmax.f32 %v246_v51, %v265_v45  ;;  %v139_v42 = vpop.permute.xlu1 %138 }
  0xb9   :  { %v302_v59 = vmax.f32 %v245_v55, %v266_v52  ;;  %v177_v60 = vmax.f32 %v113_v53, %v139_v42  ;;  %v137_v61 = vpop.permute.xlu0 %136 }
  0xba   :  { %322 = vst.msk [vmem:[%s613_s1 + $0x30] sm:$0xff] %vm314_vm3, %v304_v57  ;;  %v176_v11 = vmax.f32 %v112_v56, %v137_v61 }
  0xbb   :  { %320 = vst.msk [vmem:[%s613_s1 + $0x20] sm:$0xff] %vm314_vm3, %v302_v59  ;;  %v214_v36 = vrot.slane %v177_v60, 1  ;;  %v271_v6 = vrot.slane %v177_v60, 2 }
  0xbc   :  { %321 = vst.msk [vmem:[%s613_s1 + $0x28] sm:$0x3f] %vm316_vm0, %v303_v58  ;;  %v213_v18 = vrot.slane %v176_v11, 1  ;;  %v270_v40 = vrot.slane %v176_v11, 2 }
  0xbd   :  { %v250_v44 = vmax.f32 %v177_v60, %v214_v36 }
  0xbe   :  { %v215_v2 = vsel %vm200_vm1, %v213_v18, %v214_v36  ;;  %v272_v1 = vsel %vm257_vm2, %v270_v40, %v271_v6 }
  0xbf   :  { %v307_v7 = vmax.f32 %v250_v44, %v271_v6  ;;  %v249_v13 = vmax.f32 %v176_v11, %v215_v2 }
  0xc0   :  { %v145_v24 = vpop.permute.xlu1 %144 }
  0xc1   :  { %325 = vst.msk [vmem:[%s613_s1 + $0x48] sm:$0x3f] %vm316_vm0, %v307_v7  ;;  %v306_v10 = vmax.f32 %v249_v13, %v272_v1  ;;  %v180_v34 = vmax.f32 %v116_v4, %v145_v24  ;;  %v143_v25 = vpop.permute.xlu0 %142 }
  0xc2   :  { %v179_v26 = vmax.f32 %v115_v21, %v143_v25 }
  0xc3   :  { %324 = vst.msk [vmem:[%s613_s1 + $0x40] sm:$0xff] %vm314_vm3, %v306_v10  ;;  %v219_v9 = vrot.slane %v180_v34, 1  ;;  %v276_v14 = vrot.slane %v180_v34, 2 }
  0xc4   :  { %v217_v41 = vrot.slane %v179_v26, 1  ;;  %v274_v47 = vrot.slane %v179_v26, 2 }
  0xc5   :  { %v221_v27 = vsel %vm200_vm1, %v219_v9, %v220_v5  ;;  %v278_v37 = vsel %vm257_vm2, %v276_v14, %v277_v20 }
  0xc6   :  { %v253_v30 = vmax.f32 %v180_v34, %v221_v27  ;;  %v218_v31 = vsel %vm200_vm1, %v216_v19, %v217_v41  ;;  %v252_v32 = vmax.f32 %v179_v26, %v217_v41  ;;  %v275_v8 = vsel %vm257_vm2, %v273_v28, %v274_v47 }
  0xc7   :  { %v251_v38 = vmax.f32 %v178_v23, %v218_v31 }
  0xc8   :  { %v310_v16 = vmax.f32 %v253_v30, %v278_v37  ;;  %v309_v5 = vmax.f32 %v252_v32, %v274_v47  ;;  %v151_v29 = vpop.permute.xlu1 %150 }
  0xc9   :  { %v308_v3 = vmax.f32 %v251_v38, %v275_v8  ;;  %v183_v17 = vmax.f32 %v119_v33, %v151_v29  ;;  %v149_v35 = vpop.permute.xlu0 %148 }
  0xca   :  { %328 = vst.msk [vmem:[%s613_s1 + $0x60] sm:$0xff] %vm314_vm3, %v310_v16  ;;  %v182_v15 = vmax.f32 %v118_v0, %v149_v35 }
  0xcb   :  { %326 = vst.msk [vmem:[%s613_s1 + $0x50] sm:$0xff] %vm314_vm3, %v308_v3  ;;  %v223_v12 = vrot.slane %v183_v17, 1  ;;  %v280_v22 = vrot.slane %v183_v17, 2 }
  0xcc   :  { %327 = vst.msk [vmem:[%s613_s1 + $0x58] sm:$0x3f] %vm316_vm0, %v309_v5  ;;  %v222_v50 = vrot.slane %v182_v15, 1  ;;  %v279_v62 = vrot.slane %v182_v15, 2 }
  0xcd   :  { %v256_v20 = vmax.f32 %v183_v17, %v223_v12 }
  0xce   :  { %v224_v39 = vsel %vm200_vm1, %v222_v50, %v223_v12  ;;  %v281_v46 = vsel %vm257_vm2, %v279_v62, %v280_v22 }
  0xcf   :  { %v313_v43 = vmax.f32 %v256_v20, %v280_v22  ;;  %v255_v45 = vmax.f32 %v182_v15, %v224_v39 }
  0xd1   :  { %331 = vst.msk [vmem:[%s613_s1 + $0x78] sm:$0x3f] %vm316_vm0, %v313_v43  ;;  %v312_v48 = vmax.f32 %v255_v45, %v281_v46 }
  0xd3   :  { %330 = vst.msk [vmem:[%s613_s1 + $0x70] sm:$0xff] %vm314_vm3, %v312_v48 }
  0xd4   :  { %336 = vsyncpa [#allocation3], 1 }

</bundles_post_ra>
